<compile_context>
chip_gen: v6e
topology: v6e:2x2x1
jax: 0.10.0
libtpu: 0.0.40
codegen_flags: <defaults>
</compile_context>

<pallas_src>
import jax
import jax.numpy as jnp
from jax.experimental import pallas as pl
from jax.experimental.pallas import tpu as pltpu


def _dma_copy_kernel(x_ref, o_ref, sem):
    # Single HBM->HBM DMA covering the whole array: no VMEM staging, no grid,
    # no per-step pipeline overhead.
    cp = pltpu.make_async_copy(x_ref, o_ref, sem)
    cp.start()
    cp.wait()


def _pallas_identity_copy(x):
    """Explicit materialized copy of x via one whole-array DMA."""
    return pl.pallas_call(
        _dma_copy_kernel,
        out_shape=jax.ShapeDtypeStruct(x.shape, x.dtype),
        in_specs=[pl.BlockSpec(memory_space=pl.ANY)],
        out_specs=pl.BlockSpec(memory_space=pl.ANY),
        scratch_shapes=[pltpu.SemaphoreType.DMA(())],
    )(x)


def empty_module_forward(x, explicit_copy=False):
    """Pallas/JAX implementation of EmptyModule.forward(x) -> x.

    By default this is a true no-op (return x): an identity module should not
    pay 2x the array bytes in HBM traffic for a copy kernel.  Pass
    explicit_copy=True only if a freshly materialized output buffer is
    semantically required; that path uses a single HBM->HBM DMA.
    """
    if not explicit_copy:
        return x
    return _pallas_identity_copy(x)


class EmptyModuleJAX:
    """Mirror of the PyTorch EmptyModule (no parameters)."""

    def __init__(self, input_dim, explicit_copy=False):
        self.input_dim = input_dim
        self.explicit_copy = explicit_copy

    def __call__(self, x):
        return empty_module_forward(x, explicit_copy=self.explicit_copy)

    def get_output_dim(self):
        return self.input_dim


if __name__ == "__main__":
    key = jax.random.PRNGKey(0)
    batch, seq, hidden = 2, 8, 32  # small shapes; input_dim == hidden
    x = jax.random.normal(key, (batch, seq, hidden), dtype=jnp.float32)

    # Fast path: identity returns x unchanged (the recommended production path).
    module = EmptyModuleJAX(input_dim=hidden)
    y_fast = module(x)
    assert y_fast.shape == x.shape and y_fast.dtype == x.dtype

    # Kernel path: explicit copy via a single HBM->HBM DMA (exercised here so
    # the Pallas kernel compiles and runs on TPU).
    module_copy = EmptyModuleJAX(input_dim=hidden, explicit_copy=True)
    y = module_copy(x)
    y = jax.block_until_ready(y)

    assert y.shape == x.shape and y.dtype == x.dtype
    assert bool(jnp.all(y == x))
    assert bool(jnp.all(y_fast == x))
    assert module.get_output_dim() == hidden
    print("KERNEL_OK")
</pallas_src>

<mosaic_0001>
module attributes {stable_mosaic.version = 11 : i64} {
  func.func @_dma_copy_kernel(%arg0: memref<2x8x32xf32, #tpu.memory_space<any>>, %arg1: memref<2x8x32xf32, #tpu.memory_space<any>>, %arg2: memref<!tpu.dma_semaphore, #tpu.memory_space<semaphore_mem>>) attributes {dimension_semantics = [], scalar_prefetch = 0 : i64, scratch_operands = 1 : i64, tpu.core_type = #tpu.core_type<tc>} {
    tpu.enqueue_dma source(%arg0 : memref<2x8x32xf32, #tpu.memory_space<any>>) target(%arg1 : memref<2x8x32xf32, #tpu.memory_space<any>>) target_semaphore(%arg2 : memref<!tpu.dma_semaphore, #tpu.memory_space<semaphore_mem>>)
    tpu.wait_dma2 semaphore(%arg2 : memref<!tpu.dma_semaphore, #tpu.memory_space<semaphore_mem>>) src(%arg0 : memref<2x8x32xf32, #tpu.memory_space<any>>) dst(%arg1 : memref<2x8x32xf32, #tpu.memory_space<any>>)
    return
  }
}

</mosaic_0001>

<bundles_post_ra>
// kernel: tpu_custom_call.1
= control target key start
LH: loop header
LB: loop body
LE: loop exit
PB: predicated region body
PF: predicated region fallthrough
CT: control target
= control target key end

     0   :  { %s29_s6 = smov [#allocation2]   ;;  %s30_s7 = smov 131072   ;;  %s48_s0 = inlined_call_operand.hbm [shape: f32[2,8,32], index: 0, kind: input, shape index: {}]   ;;  %s49_s1 = inlined_call_operand.hbm [shape: f32[2,8,32], index: 1, kind: output, shape index: {}]  }
   0x1   :  { %s31_s8 = smov 0  }
   0x2   :  { %12 = dma.general %s48_s0, 256, %s49_s1, %s29_s6, %s30_s7, [#allocation4], %s31_s8, 0  }
   0x3   :  { %27 = dma.done.wait [#allocation2], 256 }
   0x4   :  { %28 = vsyncadd [#allocation2], 4294967040 }
   0x5   :  { %17 = vsyncmov [#allocation2] }
   0x8   :  { %s18_s13 = vpop.sfrf %17 }
   0x9   :  { %p23_p0 = scmp.ne.s32.totalorder %s18_s13, 0 }
   0xb   :  { %22 = shalt.err (%p23_p0)  }

</bundles_post_ra>
